<compile_context>
chip_gen: v7x
topology: tpu7x:2x2x1
jax: 0.10.0
libtpu: 0.0.40
codegen_flags: <defaults>
</compile_context>

<pallas_src>
import jax
import jax.numpy as jnp
from jax.experimental import pallas as pl
from jax.experimental.pallas import tpu as pltpu


def _round_up(x, m):
    return (x + m - 1) // m * m


def _padded_bytes(rows, cols, itemsize=4):
    return _round_up(rows, 8) * _round_up(cols, 128) * itemsize


def _odefunc_kernel(t_ref, yc_ref, w1_ref, w1t_ref, b1_ref, w2_ref, b2_ref,
                    m_ref, dy_ref, negdiv_ref):
    t = t_ref[0]                                   # SMEM scalar
    yc = yc_ref[...]                               # (D+C, TB), batch on lanes

    # pre = W1_yc^T [y; c] + t * w1t + b1  -- single fused first-layer matmul.
    pre = (jnp.dot(w1_ref[...], yc, preferred_element_type=jnp.float32)
           + t * w1t_ref[...]
           + b1_ref[...])                          # (H, TB)
    h = jnp.tanh(pre)                              # EUP, f32

    dy = (jnp.dot(w2_ref[...], h, preferred_element_type=jnp.float32)
          + b2_ref[...])                           # (D, TB)
    dy_ref[...] = dy.astype(dy_ref.dtype)

    # Exact Jacobian trace: tr(J_b) = sum_k (1 - h_bk^2) * m_k, as a
    # lane-dense (1,H) @ (H,TB) MXU contraction -- no transpose needed in
    # this layout.
    one_minus_h2 = 1.0 - h * h                     # (H, TB)
    div_row = jnp.dot(m_ref[...], one_minus_h2,
                      preferred_element_type=jnp.float32)    # (1, TB)
    negdiv_ref[...] = -div_row                     # f32 out, lane-dense


def precompute_diffeq_params(params, d):
    """Once-per-ODE-solve parameter prep: feature-major transposes, fused
    y/context half of W1, and the closed-form trace weights m."""
    W1, b1, W2, b2 = params                        # (D+1+C,H), (H,), (H,D), (D,)
    H = W1.shape[1]
    W1y = W1[:d, :]                                # (D, H)
    w1t = W1[d:d + 1, :]                           # (1, H)
    W1c = W1[d + 1:, :]                            # (C, H)
    w1_yc_t = jnp.concatenate([W1y, W1c], axis=0).T            # (H, D+C)
    m = jnp.sum(W1y * W2.T, axis=0).reshape(1, H)               # (1, H)
    return (w1_yc_t.astype(jnp.float32),
            w1t.T.astype(jnp.float32),                          # (H, 1)
            b1.reshape(H, 1).astype(jnp.float32),               # (H, 1)
            W2.T.astype(jnp.float32),                           # (D, H)
            b2.reshape(-1, 1).astype(jnp.float32),              # (D, 1)
            m.astype(jnp.float32))


def odefunc_forward_t(t, yc_t, pre_params, *, max_tile=8192, num_tensorcores=1):
    """Batch-on-lanes forward.

    yc_t: (D+C, B) slab, y features stacked above context features.  An ODE
    integrator should hold the state in this layout for the whole solve (the
    context rows have zero time-derivative), so no per-step transpose/concat
    is needed.  Returns (dy_t (D, B) in yc_t.dtype, negdiv (B,) float32).
    """
    w1_yc_t, w1t_t, b1_t, w2_t, b2_t, m = pre_params
    DC, B = yc_t.shape
    H = w1_yc_t.shape[0]
    D = w2_t.shape[0]

    # --- batch-tile selection ------------------------------------------------
    # One lane-dense tile covering the whole batch when it fits (best on
    # v5e/v6e: 1 TC/chip, per-step overhead ~600 cyc); a >=2-way 128-aligned
    # split when the caller asks for it (v7x megacore, num_tensorcores=2) or
    # when the batch exceeds max_tile.  Whenever grid > 1 the tile is a
    # multiple of 128 so every block stays legal; an uneven last block is
    # masked by Pallas, so there is no per-step jnp.pad of the state.
    if B <= max_tile:
        if num_tensorcores >= 2 and B >= 2 * 128:
            tb = _round_up(pl.cdiv(B, num_tensorcores), 128)
        else:
            tb = B
    else:
        tb = max(128, (max_tile // 128) * 128)
    grid = (pl.cdiv(B, tb),)

    t_arr = jnp.asarray(t, dtype=jnp.float32).reshape(1)

    flops = int(2 * B * H * (DC + D + 1))
    bytes_acc = int(4 * (B * (DC + D + 1) + H * (DC + D + 3) + D))
    cost = pl.CostEstimate(flops=flops, transcendentals=int(B * H),
                           bytes_accessed=bytes_acc)

    # Scoped-VMEM budget: double-buffered streamed tiles + resident weights +
    # the (H, TB) intermediates, with 2x headroom.  Set explicitly because the
    # v5e default scoped limit is only 16 MiB; capped well under v7x's 64 MiB.
    stream = (2 * (_padded_bytes(DC, tb) + _padded_bytes(D, tb)
                   + _padded_bytes(1, tb))
              + 2 * _padded_bytes(H, tb))
    weights = 2 * (_padded_bytes(H, DC) + 2 * _padded_bytes(H, 1)
                   + _padded_bytes(D, H) + _padded_bytes(D, 1)
                   + _padded_bytes(1, H))
    vmem_limit = int(min(max(2 * (stream + weights), 8 << 20), 48 << 20))
    # TODO(synk): at FFJORD scale (H ~ 512-1024, tb ~ 16-32K) also mark the
    # constant-index weight specs pipeline_mode=pl.Buffered(1) to drop their
    # second buffer on v7x; at this demo scale it changes nothing.

    dy_t, negdiv = pl.pallas_call(
        _odefunc_kernel,
        out_shape=(jax.ShapeDtypeStruct((D, B), yc_t.dtype),
                   jax.ShapeDtypeStruct((1, B), jnp.float32)),
        grid=grid,
        in_specs=[
            pl.BlockSpec(memory_space=pltpu.MemorySpace.SMEM),  # t (scalar)
            pl.BlockSpec((DC, tb), lambda i: (0, i)),           # [y; c] slab
            pl.BlockSpec((H, DC), lambda i: (0, 0)),            # W1_yc^T (resident)
            pl.BlockSpec((H, 1), lambda i: (0, 0)),             # w1t^T   (resident)
            pl.BlockSpec((H, 1), lambda i: (0, 0)),             # b1      (resident)
            pl.BlockSpec((D, H), lambda i: (0, 0)),             # W2^T    (resident)
            pl.BlockSpec((D, 1), lambda i: (0, 0)),             # b2      (resident)
            pl.BlockSpec((1, H), lambda i: (0, 0)),             # m trace weights
        ],
        out_specs=(pl.BlockSpec((D, tb), lambda i: (0, i)),     # dy   (lane-dense)
                   pl.BlockSpec((1, tb), lambda i: (0, i))),    # -div (lane-dense)
        compiler_params=pltpu.CompilerParams(
            dimension_semantics=("parallel",),
            vmem_limit_bytes=vmem_limit),
        cost_estimate=cost,
    )(t_arr, yc_t, w1_yc_t, w1t_t, b1_t, w2_t, b2_t, m)

    return dy_t, negdiv[0]


def odefunc_forward(t, states, pre_params, **tile_kwargs):
    """Pallas port of ODEfunc.forward (MLP diffeq, exact trace, residual=False).

    states = (y, logp, context); returns (dy, -divergence, zeros_like(context)).
    A real ODE integration should keep the state in the stacked feature-major
    (D+C, B) layout and call odefunc_forward_t directly, so the transpose /
    concat below does not recur on every solver step.
    """
    y, _logp, context = states
    yc_t = jnp.concatenate([y, context], axis=1).T     # (D+C, B)
    dy_t, negdiv = odefunc_forward_t(t, yc_t, pre_params, **tile_kwargs)
    # TODO(synk): the stateful _num_evals counter and the unused Hutchinson
    # (divergence_approx / rademacher) sampling path are host-side PyTorch
    # state with no Pallas equivalent.
    return dy_t.T, negdiv, jnp.zeros_like(context)


# ---------------- pure-JAX reference (mirrors the PyTorch semantics) --------
def _diffeq_single(t, y, c, params):
    W1, b1, W2, b2 = params
    z = jnp.concatenate([y, jnp.full((1,), t, y.dtype), c])
    h = jnp.tanh(z @ W1 + b1)
    return h @ W2 + b2


def _reference_forward(t, states, params):
    y, _logp, context = states
    dy = jax.vmap(lambda yy, cc: _diffeq_single(t, yy, cc, params))(y, context)
    # vmap(jacrev(diffeq, argnums=1)) then batch trace -- exactly the module.
    jac = jax.vmap(jax.jacrev(lambda yy, cc: _diffeq_single(t, yy, cc, params),
                              argnums=0))(y, context)          # (B, D, D)
    divergence = jnp.trace(jac, axis1=1, axis2=2)               # (B,)
    return dy, -divergence, jnp.zeros_like(context)


if __name__ == "__main__":
    key = jax.random.PRNGKey(0)
    k_y, k_c, k_w1, k_b1, k_w2, k_b2 = jax.random.split(key, 6)

    B, D, C, H = 8, 4, 3, 32           # batch, y-dim, context-dim, hidden
    t = jnp.float32(0.5)

    y = jax.random.normal(k_y, (B, D), dtype=jnp.float32)
    logp = jnp.zeros((B, 1), dtype=jnp.float32)
    context = jax.random.normal(k_c, (B, C), dtype=jnp.float32)

    Din = D + 1 + C
    W1 = jax.random.normal(k_w1, (Din, H), dtype=jnp.float32) * 0.3
    b1 = jax.random.normal(k_b1, (H,), dtype=jnp.float32) * 0.1
    W2 = jax.random.normal(k_w2, (H, D), dtype=jnp.float32) * 0.3
    b2 = jax.random.normal(k_b2, (D,), dtype=jnp.float32) * 0.1
    params = (W1, b1, W2, b2)

    # Once-per-ODE-solve precompute (hoisted out of the per-step call).
    pre_params = precompute_diffeq_params(params, D)
    fwd = jax.jit(odefunc_forward)

    states = (y, logp, context)
    dy, negdiv, zeros_ctx = fwd(t, states, pre_params)
    jax.block_until_ready((dy, negdiv, zeros_ctx))

    dy_ref, negdiv_ref, _ = _reference_forward(t, states, params)
    assert jnp.allclose(dy, dy_ref, atol=1e-5, rtol=1e-5)
    assert jnp.allclose(negdiv, negdiv_ref, atol=1e-5, rtol=1e-5)
    assert zeros_ctx.shape == context.shape and bool(jnp.all(zeros_ctx == 0))

    print("KERNEL_OK")
</pallas_src>

<mosaic_0001>
module attributes {stable_mosaic.version = 11 : i64} {
  func.func @_odefunc_kernel(%arg0: i32, %arg1: memref<1xf32, #tpu.memory_space<smem>>, %arg2: memref<7x8xf32, #tpu.memory_space<vmem>>, %arg3: memref<32x7xf32, #tpu.memory_space<vmem>>, %arg4: memref<32x1xf32, #tpu.memory_space<vmem>>, %arg5: memref<32x1xf32, #tpu.memory_space<vmem>>, %arg6: memref<4x32xf32, #tpu.memory_space<vmem>>, %arg7: memref<4x1xf32, #tpu.memory_space<vmem>>, %arg8: memref<1x32xf32, #tpu.memory_space<vmem>>, %arg9: memref<4x8xf32, #tpu.memory_space<vmem>>, %arg10: memref<1x8xf32, #tpu.memory_space<vmem>>) attributes {dimension_semantics = [#tpu.dimension_semantics<parallel>], iteration_bounds = array<i64: 1>, scalar_prefetch = 0 : i64, scratch_operands = 0 : i64, tpu.core_type = #tpu.core_type<tc>, window_params = [{transform_indices = @transform_0, window_bounds = array<i64: 1>}, {transform_indices = @transform_1, window_bounds = array<i64: 7, 8>}, {pipeline_mode = #tpu.pipeline_mode<synchronous>, transform_indices = @transform_2, window_bounds = array<i64: 32, 7>}, {pipeline_mode = #tpu.pipeline_mode<synchronous>, transform_indices = @transform_3, window_bounds = array<i64: 32, 1>}, {pipeline_mode = #tpu.pipeline_mode<synchronous>, transform_indices = @transform_4, window_bounds = array<i64: 32, 1>}, {pipeline_mode = #tpu.pipeline_mode<synchronous>, transform_indices = @transform_5, window_bounds = array<i64: 4, 32>}, {pipeline_mode = #tpu.pipeline_mode<synchronous>, transform_indices = @transform_6, window_bounds = array<i64: 4, 1>}, {pipeline_mode = #tpu.pipeline_mode<synchronous>, transform_indices = @transform_7, window_bounds = array<i64: 1, 32>}, {transform_indices = @transform_8, window_bounds = array<i64: 4, 8>}, {transform_indices = @transform_9, window_bounds = array<i64: 1, 8>}]} {
    %c0 = arith.constant 0 : index
    %0 = memref.load %arg1[%c0] : memref<1xf32, #tpu.memory_space<smem>>
    %c0_0 = arith.constant 0 : index
    %c0_1 = arith.constant 0 : index
    %1 = vector.load %arg2[%c0_0, %c0_1] : memref<7x8xf32, #tpu.memory_space<vmem>>, vector<7x8xf32>
    %c0_2 = arith.constant 0 : index
    %c0_3 = arith.constant 0 : index
    %2 = vector.load %arg3[%c0_2, %c0_3] : memref<32x7xf32, #tpu.memory_space<vmem>>, vector<32x7xf32>
    %cst = arith.constant dense<0.000000e+00> : vector<32x8xf32>
    %3 = tpu.matmul %2, %1, %cst {dimension_numbers = #tpu.dot_dimension_numbers<[1], [0], [0], [1], [0, 0, 1, 1], [], []>} : vector<32x7xf32>, vector<7x8xf32>, vector<32x8xf32> -> vector<32x8xf32>
    %c0_4 = arith.constant 0 : index
    %c0_5 = arith.constant 0 : index
    %4 = vector.load %arg4[%c0_4, %c0_5] : memref<32x1xf32, #tpu.memory_space<vmem>>, vector<32x1xf32>
    %5 = vector.broadcast %0 : f32 to vector<32x1xf32>
    %6 = arith.mulf %5, %4 : vector<32x1xf32>
    %7 = vector.broadcast %6 : vector<32x1xf32> to vector<32x8xf32>
    %8 = arith.addf %3, %7 : vector<32x8xf32>
    %c0_6 = arith.constant 0 : index
    %c0_7 = arith.constant 0 : index
    %9 = vector.load %arg5[%c0_6, %c0_7] : memref<32x1xf32, #tpu.memory_space<vmem>>, vector<32x1xf32>
    %10 = vector.broadcast %9 : vector<32x1xf32> to vector<32x8xf32>
    %11 = arith.addf %8, %10 : vector<32x8xf32>
    %12 = math.tanh %11 : vector<32x8xf32>
    %c0_8 = arith.constant 0 : index
    %c0_9 = arith.constant 0 : index
    %13 = vector.load %arg6[%c0_8, %c0_9] : memref<4x32xf32, #tpu.memory_space<vmem>>, vector<4x32xf32>
    %cst_10 = arith.constant dense<0.000000e+00> : vector<4x8xf32>
    %14 = tpu.matmul %13, %12, %cst_10 {dimension_numbers = #tpu.dot_dimension_numbers<[1], [0], [0], [1], [0, 0, 1, 1], [], []>} : vector<4x32xf32>, vector<32x8xf32>, vector<4x8xf32> -> vector<4x8xf32>
    %c0_11 = arith.constant 0 : index
    %c0_12 = arith.constant 0 : index
    %15 = vector.load %arg7[%c0_11, %c0_12] : memref<4x1xf32, #tpu.memory_space<vmem>>, vector<4x1xf32>
    %16 = vector.broadcast %15 : vector<4x1xf32> to vector<4x8xf32>
    %17 = arith.addf %14, %16 : vector<4x8xf32>
    %c0_13 = arith.constant 0 : index
    %c0_14 = arith.constant 0 : index
    %18 = vector.load %arg9[%c0_13, %c0_14] : memref<4x8xf32, #tpu.memory_space<vmem>>, vector<4x8xf32>
    tpu.vector_store %arg9[%c0_13, %c0_14], %17 {strides = array<i32>} : memref<4x8xf32, #tpu.memory_space<vmem>>, vector<4x8xf32>,
    %19 = arith.mulf %12, %12 : vector<32x8xf32>
    %cst_15 = arith.constant 1.000000e+00 : f32
    %20 = vector.broadcast %cst_15 : f32 to vector<32x8xf32>
    %21 = arith.subf %20, %19 : vector<32x8xf32>
    %c0_16 = arith.constant 0 : index
    %c0_17 = arith.constant 0 : index
    %22 = vector.load %arg8[%c0_16, %c0_17] : memref<1x32xf32, #tpu.memory_space<vmem>>, vector<1x32xf32>
    %cst_18 = arith.constant dense<0.000000e+00> : vector<1x8xf32>
    %23 = tpu.matmul %22, %21, %cst_18 {dimension_numbers = #tpu.dot_dimension_numbers<[1], [0], [0], [1], [0, 0, 1, 1], [], []>} : vector<1x32xf32>, vector<32x8xf32>, vector<1x8xf32> -> vector<1x8xf32>
    %cst_19 = arith.constant 0.000000e+00 : f32
    %24 = vector.broadcast %cst_19 : f32 to vector<1x8xf32>
    %25 = arith.subf %24, %23 : vector<1x8xf32>
    %c0_20 = arith.constant 0 : index
    %c0_21 = arith.constant 0 : index
    %26 = vector.load %arg10[%c0_20, %c0_21] : memref<1x8xf32, #tpu.memory_space<vmem>>, vector<1x8xf32>
    tpu.vector_store %arg10[%c0_20, %c0_21], %25 {strides = array<i32>} : memref<1x8xf32, #tpu.memory_space<vmem>>, vector<1x8xf32>,
    return
  }
  func.func @transform_0(%arg0: i32) -> i32 {
    %c0_i32 = arith.constant 0 : i32
    %c0_i32_0 = arith.constant 0 : i32
    return %c0_i32 : i32
  }
  func.func @transform_1(%arg0: i32) -> (i32, i32) {
    %c0_i32 = arith.constant 0 : i32
    %c0_i32_0 = arith.constant 0 : i32
    return %c0_i32, %arg0 : i32, i32
  }
  func.func @transform_2(%arg0: i32) -> (i32, i32) {
    %c0_i32 = arith.constant 0 : i32
    %c0_i32_0 = arith.constant 0 : i32
    %c0_i32_1 = arith.constant 0 : i32
    return %c0_i32, %c0_i32_0 : i32, i32
  }
  func.func @transform_3(%arg0: i32) -> (i32, i32) {
    %c0_i32 = arith.constant 0 : i32
    %c0_i32_0 = arith.constant 0 : i32
    %c0_i32_1 = arith.constant 0 : i32
    return %c0_i32, %c0_i32_0 : i32, i32
  }
  func.func @transform_4(%arg0: i32) -> (i32, i32) {
    %c0_i32 = arith.constant 0 : i32
    %c0_i32_0 = arith.constant 0 : i32
    %c0_i32_1 = arith.constant 0 : i32
    return %c0_i32, %c0_i32_0 : i32, i32
  }
  func.func @transform_5(%arg0: i32) -> (i32, i32) {
    %c0_i32 = arith.constant 0 : i32
    %c0_i32_0 = arith.constant 0 : i32
    %c0_i32_1 = arith.constant 0 : i32
    return %c0_i32, %c0_i32_0 : i32, i32
  }
  func.func @transform_6(%arg0: i32) -> (i32, i32) {
    %c0_i32 = arith.constant 0 : i32
    %c0_i32_0 = arith.constant 0 : i32
    %c0_i32_1 = arith.constant 0 : i32
    return %c0_i32, %c0_i32_0 : i32, i32
  }
  func.func @transform_7(%arg0: i32) -> (i32, i32) {
    %c0_i32 = arith.constant 0 : i32
    %c0_i32_0 = arith.constant 0 : i32
    %c0_i32_1 = arith.constant 0 : i32
    return %c0_i32, %c0_i32_0 : i32, i32
  }
  func.func @transform_8(%arg0: i32) -> (i32, i32) {
    %c0_i32 = arith.constant 0 : i32
    %c0_i32_0 = arith.constant 0 : i32
    return %c0_i32, %arg0 : i32, i32
  }
  func.func @transform_9(%arg0: i32) -> (i32, i32) {
    %c0_i32 = arith.constant 0 : i32
    %c0_i32_0 = arith.constant 0 : i32
    return %c0_i32, %arg0 : i32, i32
  }
}

</mosaic_0001>

<bundles_post_ra>
// kernel: odefunc_forward.1
= control target key start
LH: loop header
LB: loop body
LE: loop exit
PB: predicated region body
PF: predicated region fallthrough
CT: control target
= control target key end

     0   :  { %16 = vsyncpa [#allocation4], 0  ;;  %vm82_vm0 = vcmask 1046528   ;;  %vm69_vm1 = vcmask 56320   ;;  %v527_v6 = vmov 0   ;;  %s662_s0 = inlined_call_operand.<no memory space> [shape: f32[1], index: 0, kind: input, shape index: {}]   ;;  %s663_s1 = inlined_call_operand.vmem [shape: f32[7,8], index: 1, kind: input, shape index: {}]   ;;  %s664_s2 = inlined_call_operand.vmem [shape: f32[32,7], index: 2, kind: input, shape index: {}]   ;;  %s665_s3 = inlined_call_operand.vmem [shape: f32[32,1], index: 3, kind: input, shape index: {}]   ;;  %s666_s4 = inlined_call_operand.vmem [shape: f32[32,1], index: 4, kind: input, shape index: {}]   ;;  %s667_s5 = inlined_call_operand.vmem [shape: f32[4,32], index: 5, kind: input, shape index: {}]   ;;  %s668_s6 = inlined_call_operand.vmem [shape: f32[4,1], index: 6, kind: input, shape index: {}]   ;;  %s669_s7 = inlined_call_operand.vmem [shape: f32[1,32], index: 7, kind: input, shape index: {}]   ;;  %s670_s8 = inlined_call_operand.hbm [shape: f32[4,8], index: 8, kind: output, shape index: {0}]   ;;  %s671_s9 = inlined_call_operand.hbm [shape: f32[1,8], index: 9, kind: output, shape index: {1}]  }
   0x1   :  { %v35_v0 = vld [vmem:[%s663_s1] sm:$0x7f]  ;;  %v37_v2 = vld [vmem:[%s664_s2 + $0x8] sm:$0xff]  ;;  %v44_v3 = vstv %s662_s0  ;;  %v38_v4 = vld [vmem:[%s664_s2 + $0x10] sm:$0xff]  ;;  %469 = vset.pattern.permute.xlu0 %v527_v6  ;;  %470 = vset.pattern.permute.xlu1 %v527_v6 }
   0x2   :  { %v36_v1 = vld [vmem:[%s664_s2] sm:$0xff]  ;;  %421 = vmatprep.subr.msk.mxu0 %vm82_vm0, %v35_v0  ;;  %v41_v9 = vld [vmem:[%s665_s3 + $0x8] sm:$0xff]  ;;  %v39_v10 = vld [vmem:[%s664_s2 + $0x18] sm:$0xff] }
   0x3   :  { %423 = vmatprep.mubr.msk.f32.mxu0 %vm69_vm1, %v36_v1  ;;  %v40_v5 = vld [vmem:[%s665_s3] sm:$0xff]  ;;  %422 = vmatpush3.msk.msra.mxu0 %vm82_vm0, %v35_v0  ;;  %v46_v11 = vmul.f32 %v44_v3, %v41_v9 }
   0x4   :  { %v45_v7 = vmul.f32 %v44_v3, %v40_v5  ;;  %v171_v8 = vld [vmem:[%s666_s4] sm:$0xff]  ;;  %424 = vmatmul.mubr.msk.f32.vlgmr.msra.gmra.mrb[0].mxu0 %vm69_vm1, %v37_v2 }
   0x5   :  { %426 = vmatprep.mubr.msk.f32.mxu0 %vm69_vm1, %v38_v4 }
   0x6   :  { %51 = vperm.xlu0 %469, %v45_v7  }
   0x7   :  { %17 = vsyncpa [#allocation6], 0  ;;  %177 = vperm.xlu1 %470, %v171_v8   ;;  %v42_v12 = vld [vmem:[%s665_s3 + $0x10] sm:$0xff]  ;;  %v172_v13 = vld [vmem:[%s666_s4 + $0x8] sm:$0xff]  ;;  %v528_v20 = vmov 0.0|0.0   ;;  %vm529_vm2 = vmmov 0  }
   0x8   :  { %v43_v14 = vld [vmem:[%s665_s3 + $0x18] sm:$0xff]  ;;  %427 = vmatmul.mubr.msk.f32.gmra.mrb[2].mxu0 %vm69_vm1, %v39_v10  ;;  %v47_v15 = vmul.f32 %v44_v3, %v42_v12  ;;  %v173_v17 = vld [vmem:[%s666_s4 + $0x10] sm:$0xff]  ;;  %v204_v19 = vld [vmem:[%s668_s6] sm:$0xf]  ;;  %451 = vmatprep.subr.bf16.mxu1 %v528_v20  ;;  %v530_v21 = vmov 0.0   ;;  %vm210_vm3 = vcmask 261120  }
   0x9   :  { %v48_v16 = vmul.f32 %v44_v3, %v43_v14  ;;  %v174_v18 = vld [vmem:[%s666_s4 + $0x18] sm:$0xff]  ;;  %457 = vmatprep.subr.bf16.mxu0 %v528_v20  ;;  %437 = vmatprep.mubr.msk.f32.mxu1 %vm529_vm2, %v530_v21  ;;  %v203_v56 = vld [vmem:[%s667_s5] sm:$0xf]  ;;  %s531_s16 = smov [#allocation3]   ;;  %vm284_vm4 = vcmask 60416   ;;  %s532_s5 = smov [#allocation5]  }
   0xa   :  { %56 = vperm.xlu0 %469, %v46_v11   ;;  %448 = vmatprep.mubr.msk.f32.mxu0 %vm529_vm2, %v530_v21  ;;  %v294_v59 = vld [vmem:[%s669_s7] sm:$0x1]  ;;  %s377_s17 = sshll.u32 %s531_s16, 4  ;;  %s387_s18 = sshll.u32 %s532_s5, 4  ;;  %s378_s17 = int_to_ptr.vmem [resolvable:$true] %s377_s17  ;;  %s388_s18 = int_to_ptr.vmem [resolvable:$true] %s387_s18 }
   0xb   :  { %182 = vperm.xlu1 %470, %v172_v13   ;;  %s479_s1 = scalar_lea.vmem %s378_s17, 64  ;;  %p484_p1 = scmp.lt.s32.totalorder %s378_s17, %s378_s17 }
   0xc   :  { %p480_p0 = scmp.ne.s32.totalorder %s378_s17, %s479_s1  ;;  %p485_p2 = scmp.lt.s32.totalorder %s479_s1, %s479_s1 }
   0xe   :  { %61 = vperm.xlu0 %469, %v47_v15   ;;  %p486_p3 = por %p485_p2, %p484_p1 }
   0xf   :  { %66 = vperm.xlu1 %470, %v48_v16  }
  0x10   :  { %p487_p4 = pnand %p486_p3, %p480_p0 }
  0x12   :  { %187 = vperm.xlu0 %469, %v173_v17  }
  0x13   :  { %192 = vperm.xlu1 %470, %v174_v18  }
  0x16   :  { %207 = vperm.xlu0 %469, %v204_v19  }
  0x85   :  { %v52_v23 = vpop.permute.xlu0 %51 }
  0x86   :  { %v178_v22 = vpop.permute.xlu1 %177 }
  0x89   :  { %v57_v25 = vpop.permute.xlu0 %56 }
  0x8a   :  { %v183_v24 = vpop.permute.xlu1 %182 }
  0x8d   :  { %v62_v28 = vpop.permute.xlu0 %61 }
  0x8e   :  { %v67_v26 = vpop.permute.xlu1 %66 }
  0x91   :  { %v188_v39 = vpop.permute.xlu0 %187 }
  0x92   :  { %v193_v37 = vpop.permute.xlu1 %192 }
  0x95   :  { %v208_v60 = vpop.permute.xlu0 %207 }
  0xd7   :  { %v425_v27 = vpop.f32.mrb[0].mxu0 }
  0xd8   :  { %v158_v29 = vadd.f32 %v425_v27, %v57_v25  ;;  %v152_v30 = vpop.f32.mrb[1].mxu0 }
  0xd9   :  { %v153_v31 = vadd.f32 %v152_v30, %v52_v23 }
  0xda   :  { %v196_v32 = vadd.f32 %v183_v24, %v158_v29 }
  0xdb   :  { %v195_v33 = vadd.f32 %v178_v22, %v153_v31  ;;  %v428_v34 = vpop.f32.mrb[2].mxu0 }
  0xdc   :  { %471 = vtanh.f32 %v196_v32  ;;  %v168_v35 = vadd.f32 %v428_v34, %v67_v26  ;;  %v162_v36 = vpop.f32.mrb[3].mxu0 }
  0xdd   :  { %473 = vtanh.f32 %v195_v33  ;;  %v163_v38 = vadd.f32 %v162_v36, %v62_v28 }
  0xde   :  { %v198_v40 = vadd.f32 %v193_v37, %v168_v35 }
  0xdf   :  { %v197_v41 = vadd.f32 %v188_v39, %v163_v38 }
  0xe0   :  { %475 = vtanh.f32 %v198_v40 }
  0xe1   :  { %477 = vtanh.f32 %v197_v41 }
  0xe6   :  { %v472_v42 = vpop.eup %471 }
  0xe7   :  { %v474_v43 = vpop.eup %473  ;;  %v287_v44 = vmul.f32 %v472_v42, %v472_v42 }
  0xe8   :  { %v452_v45 = vpack.c.bf16 %v472_v42, %v474_v43  ;;  %v286_v46 = vmul.f32 %v474_v43, %v474_v43 }
  0xe9   :  { %v291_v47 = vsub.f32 1.0, %v287_v44 }
  0xea   :  { %v476_v48 = vpop.eup %475  ;;  %453 = vmatpush3.bf16.msra.mxu1 %v452_v45  ;;  %v290_v49 = vsub.f32 1.0, %v286_v46 }
  0xeb   :  { %v478_v50 = vpop.eup %477  ;;  %454 = vmatprep.subr.bf16.mxu1 %v528_v20  ;;  %v289_v51 = vmul.f32 %v476_v48, %v476_v48 }
  0xec   :  { %v455_v52 = vpack.c.bf16 %v476_v48, %v478_v50  ;;  %v458_v53 = vpack.c.bf16 %v291_v47, %v290_v49  ;;  %v288_v54 = vmul.f32 %v478_v50, %v478_v50 }
  0xed   :  { %v293_v55 = vsub.f32 1.0, %v289_v51 }
  0xee   :  { %456 = vmatpush3.bf16.msra.mxu1 %v455_v52  ;;  %459 = vmatpush3.bf16.msra.mxu0 %v458_v53  ;;  %v292_v57 = vsub.f32 1.0, %v288_v54 }
  0xef   :  { %460 = vmatprep.subr.bf16.mxu0 %v528_v20 }
  0xf0   :  { %v461_v58 = vpack.c.bf16 %v293_v55, %v292_v57 }
  0xf1   :  { %438 = vmatmul.mubr.msk.f32.vlgmr.msra.gmra.mrb[0].mxu1 %vm210_vm3, %v203_v56 }
  0xf2   :  { %462 = vmatpush3.bf16.msra.mxu0 %v461_v58 }
  0xf5   :  { %449 = vmatmul.mubr.msk.f32.vlgmr.msra.gmra.mrb[4].mxu0 %vm210_vm3, %v294_v59 }
 0x1c4   :  { %v280_v61 = vpop.f32.mrb[0].mxu1 }
 0x1c5   :  { %v281_v62 = vadd.f32 %v280_v61, %v208_v60  ;;  %v439_v63 = vpop.f32.mrb[1].mxu1 }
 0x1c7   :  { %285 = vst.msk [vmem:[#allocation3] sm:$0xf] %vm284_vm4, %v281_v62 }
 0x1c8   :  { %v364_v0 = vpop.f32.mrb[4].mxu0 }
 0x1c9   :  { %490 = shalt.err (!%p487_p4)
}
 0x1ca   :  { %s491_s20 = scalar_lea.hbm %s670_s8, 64 }
 0x1cb   :  { %p492_p5 = scmp.ne.s32.totalorder %s670_s8, %s491_s20  ;;  %p495_p6 = scmp.lt.u32.totalorder %s491_s20, %s670_s8 }
 0x1cd   :  { %p497_p7 = pnand %p495_p6, %p492_p5 }
 0x1cf   :  { %500 = shalt.err (!%p497_p7)
}
 0x1d0   :  { %380 = dma.vmem_to_hbm [thread:$0]  %s378_s17, 64, %s670_s8, [#allocation4]   ;;  %vm369_vm5 = vcmask 57344   ;;  %v368_v1 = vsub.f32 0.0, %v364_v0  ;;  %v450_v2 = vpop.f32.mrb[5].mxu0 }
 0x1d1   :  { %s501_s26 = scalar_lea.vmem %s388_s18, 16  ;;  %s505_s27 = scalar_lea.vmem %s388_s18, 32 }
 0x1d2   :  { %370 = vst.msk [vmem:[#allocation5] sm:$0x1] %vm369_vm5, %v368_v1  ;;  %p502_p8 = scmp.ne.s32.totalorder %s388_s18, %s501_s26  ;;  %p506_p9 = scmp.lt.s32.totalorder %s388_s18, %s388_s18 }
 0x1d3   :  { %p507_p10 = scmp.lt.s32.totalorder %s505_s27, %s501_s26 }
 0x1d5   :  { %p508_p11 = por %p507_p10, %p506_p9 }
 0x1d7   :  { %p509_p12 = pnand %p508_p11, %p502_p8 }
 0x1d9   :  { %512 = shalt.err (!%p509_p12)
}
 0x1da   :  { %s513_s30 = scalar_lea.hbm %s671_s9, 16 }
 0x1db   :  { %p514_p13 = scmp.ne.s32.totalorder %s671_s9, %s513_s30  ;;  %p517_p0 = scmp.lt.u32.totalorder %s513_s30, %s671_s9 }
 0x1dd   :  { %p519_p1 = pnand %p517_p0, %p514_p13 }
 0x1df   :  { %522 = shalt.err (!%p519_p1)
}
 0x1e0   :  { %390 = dma.vmem_to_hbm [thread:$0]  %s388_s18, 16, %s671_s9, [#allocation6]  }
 0x1e1   :  { %523 = dma.done.wait [#allocation4], 64  }
 0x1e2   :  { %524 = vsyncadd [#allocation4], 4294967232 }
 0x1e3   :  { %525 = dma.done.wait [#allocation6], 16  }
 0x1e4   :  { %526 = vsyncadd [#allocation6], 4294967280 }
 0x1e5   :  { %397 = vsyncpa [#allocation4], 1 }
 0x1e6   :  { %398 = vsyncpa [#allocation6], 1 }

</bundles_post_ra>
